<compile_context>
chip_gen: v5e
topology: v5e:2x2
jax: 0.10.0
libtpu: 0.0.40
codegen_flags: <defaults>
</compile_context>

<pallas_src>
import functools
import math

import jax
import jax.numpy as jnp
from jax.experimental import pallas as pl
from jax.experimental.pallas import tpu as pltpu


def _round_up(v, m):
    return ((v + m - 1) // m) * m


# ---------------------------------------------------------------------------
# Tiled linear kernel:  y = x @ W.T + b   (optionally fused  exp(.) + 1e-4)
# ---------------------------------------------------------------------------
def _linear_kernel(x_ref, w_ref, b_ref, o_ref, acc_ref, *, activation):
    k = pl.program_id(2)

    @pl.when(k == 0)
    def _():
        acc_ref[...] = jnp.zeros_like(acc_ref)

    # Contract directly on the shared input axis: x (tb, tk) . W (th, tk) -> (tb, th).
    # No transpose of the weight tile before the MXU.
    acc_ref[...] += jax.lax.dot_general(
        x_ref[...], w_ref[...],
        dimension_numbers=(((1,), (1,)), ((), ())),
        preferred_element_type=jnp.float32,
    )

    @pl.when(k == pl.num_programs(2) - 1)
    def _():
        y = acc_ref[...] + b_ref[...]
        if activation == "exp_eps":      # var head: exp(logits) + 1e-4, fused
            y = jnp.exp(y) + 1e-4
        o_ref[...] = y.astype(o_ref.dtype)


def linear_pallas(x, w, b, *, activation=None,
                  block_b=None, block_h=None, block_k=None):
    """y = x @ w.T + b with optional fused activation.

    x: (B, I), w: (H, I), b: (H,)  ->  (B, H)
    Pads B to a multiple of 8 and I/H to multiples of 128, tiles (B, H, I).
    """
    B, I = x.shape
    H, I2 = w.shape
    assert I == I2 and b.shape == (H,)

    bb = block_b or (256 if B >= 256 else _round_up(B, 8))
    bh = block_h or (256 if H >= 256 else _round_up(H, 128))
    bk = block_k or (512 if I >= 512 else _round_up(I, 128))

    B_pad = _round_up(B, bb)
    H_pad = _round_up(H, bh)
    I_pad = _round_up(I, bk)

    x_p = jnp.pad(x, ((0, B_pad - B), (0, I_pad - I)))
    w_p = jnp.pad(w, ((0, H_pad - H), (0, I_pad - I)))
    b_p = jnp.pad(b, (0, H_pad - H)).reshape(1, H_pad)

    grid = (B_pad // bb, H_pad // bh, I_pad // bk)

    out = pl.pallas_call(
        functools.partial(_linear_kernel, activation=activation),
        out_shape=jax.ShapeDtypeStruct((B_pad, H_pad), x.dtype),
        grid_spec=pltpu.PrefetchScalarGridSpec(
            num_scalar_prefetch=0,
            grid=grid,
            in_specs=[
                pl.BlockSpec((bb, bk), lambda i, j, k: (i, k)),   # x tile
                pl.BlockSpec((bh, bk), lambda i, j, k: (j, k)),   # pre-masked weight tile
                pl.BlockSpec((1, bh), lambda i, j, k: (0, j)),    # bias tile
            ],
            out_specs=pl.BlockSpec((bb, bh), lambda i, j, k: (i, j)),
            scratch_shapes=[pltpu.VMEM((bb, bh), jnp.float32)],
        ),
        compiler_params=pltpu.CompilerParams(
            dimension_semantics=("parallel", "parallel", "arbitrary"),
        ),
    )(x_p, w_p, b_p)
    return out[:B, :H]


# ---------------------------------------------------------------------------
# Fused BatchNorm1d (training-mode batch statistics, affine=identity at init) + ReLU
# ---------------------------------------------------------------------------
def _bn_relu_kernel(x_ref, o_ref, *, eps):
    x = x_ref[...].astype(jnp.float32)                       # (B, th)
    mean = jnp.mean(x, axis=0, keepdims=True)
    var = jnp.mean((x - mean) ** 2, axis=0, keepdims=True)   # biased variance (torch BN fwd)
    y = (x - mean) * jax.lax.rsqrt(var + eps)
    o_ref[...] = jnp.maximum(y, 0.0).astype(o_ref.dtype)


def batchnorm_relu_pallas(x, *, eps=1e-3):
    B, H = x.shape
    bh = 128 if H % 128 == 0 else H   # full-dim block when H isn't lane-aligned
    grid = (H // bh,)
    return pl.pallas_call(
        functools.partial(_bn_relu_kernel, eps=eps),
        out_shape=jax.ShapeDtypeStruct((B, H), x.dtype),
        grid_spec=pltpu.PrefetchScalarGridSpec(
            num_scalar_prefetch=0,
            grid=grid,
            in_specs=[pl.BlockSpec((B, bh), lambda j: (0, j))],
            out_specs=pl.BlockSpec((B, bh), lambda j: (0, j)),
        ),
        compiler_params=pltpu.CompilerParams(dimension_semantics=("parallel",)),
    )(x)


# ---------------------------------------------------------------------------
# Encoder: parameter init (mirrors the PyTorch module) and forward pass
# ---------------------------------------------------------------------------
def init_encoder_params(key, n_input, n_hidden, n_output, connections):
    """Mirrors torch inits: kaiming_uniform_(a=sqrt(5)) => uniform(+-1/sqrt(fan_in))."""
    ks = jax.random.split(key, 6)

    b1_bound = 1.0 / math.sqrt(n_input)
    head_bound = 1.0 / math.sqrt(n_hidden)

    params = {
        # CustomConnected(n_input, n_hidden)
        "w1": jax.random.uniform(ks[0], (n_hidden, n_input), jnp.float32,
                                 minval=-b1_bound, maxval=b1_bound),
        "b1": jax.random.uniform(ks[1], (n_hidden,), jnp.float32,
                                 minval=-b1_bound, maxval=b1_bound),
        "connections": connections.astype(jnp.float32),
        # mean_encoder = nn.Linear(n_hidden, n_output)
        "wm": jax.random.uniform(ks[2], (n_output, n_hidden), jnp.float32,
                                 minval=-head_bound, maxval=head_bound),
        "bm": jax.random.uniform(ks[3], (n_output,), jnp.float32,
                                 minval=-head_bound, maxval=head_bound),
        # var_encoder = nn.Linear(n_hidden, n_output)
        "wv": jax.random.uniform(ks[4], (n_output, n_hidden), jnp.float32,
                                 minval=-head_bound, maxval=head_bound),
        "bv": jax.random.uniform(ks[5], (n_output,), jnp.float32,
                                 minval=-head_bound, maxval=head_bound),
    }
    return params


def encoder_forward(params, x, eps_key):
    """Returns (q_m, q_v, latent) like Encoder.forward. batch_index is unused
    because n_cat_list=None (no one-hot covariates are concatenated)."""
    # CustomConnected: mask the weights ONCE outside the kernel (cheap XLA elementwise).
    enforced_w = params["w1"] * params["connections"]
    h = linear_pallas(x, enforced_w, params["b1"])

    # BatchNorm1d(momentum=0.01, eps=0.001) with batch statistics + ReLU, fused.
    q = batchnorm_relu_pallas(h, eps=1e-3)
    # TODO(synk): nn.Dropout(p=0.1) treated as identity (eval-mode); torch RNG mask
    #             cannot be reproduced deterministically here.

    q_m = linear_pallas(q, params["wm"], params["bm"])
    q_v = linear_pallas(q, params["wv"], params["bv"], activation="exp_eps")

    # reparameterize_gaussian: Normal(q_m, sqrt(q_v)).rsample(); z_transformation = identity.
    eps = jax.random.normal(eps_key, q_m.shape, q_m.dtype)
    latent = q_m + jnp.sqrt(q_v) * eps
    return q_m, q_v, latent


if __name__ == "__main__":
    key = jax.random.PRNGKey(0)
    k_x, k_p, k_c, k_eps = jax.random.split(key, 4)

    batch, n_input, n_hidden, n_output = 8, 48, 128, 16

    x = jax.random.normal(k_x, (batch, n_input), jnp.float32)
    connections = (jax.random.uniform(k_c, (n_hidden, n_input)) > 0.5).astype(jnp.float32)
    params = init_encoder_params(k_p, n_input, n_hidden, n_output, connections)

    forward = jax.jit(encoder_forward)
    q_m, q_v, latent = forward(params, x, k_eps)
    q_m, q_v, latent = jax.block_until_ready((q_m, q_v, latent))

    # Pure-JAX reference for the deterministic parts (same math as the PyTorch forward).
    ew = params["w1"] * connections
    h_ref = x @ ew.T + params["b1"]
    mu = h_ref.mean(axis=0, keepdims=True)
    var = ((h_ref - mu) ** 2).mean(axis=0, keepdims=True)
    q_ref = jnp.maximum((h_ref - mu) * jax.lax.rsqrt(var + 1e-3), 0.0)
    qm_ref = q_ref @ params["wm"].T + params["bm"]
    qv_ref = jnp.exp(q_ref @ params["wv"].T + params["bv"]) + 1e-4

    assert q_m.shape == (batch, n_output)
    assert q_v.shape == (batch, n_output)
    assert latent.shape == (batch, n_output)
    assert jnp.allclose(q_m, qm_ref, atol=2e-4, rtol=2e-4)
    assert jnp.allclose(q_v, qv_ref, atol=2e-4, rtol=2e-4)
    assert bool(jnp.all(q_v > 0))

    print("KERNEL_OK")
</pallas_src>

<mosaic_0001>
module attributes {stable_mosaic.version = 11 : i64} {
  func.func @_bn_relu_kernel(%arg0: i32, %arg1: memref<8x128xf32, #tpu.memory_space<vmem>>, %arg2: memref<8x128xf32, #tpu.memory_space<vmem>>) attributes {dimension_semantics = [#tpu.dimension_semantics<parallel>], iteration_bounds = array<i64: 1>, scalar_prefetch = 0 : i64, scratch_operands = 0 : i64, tpu.core_type = #tpu.core_type<tc>, window_params = [{transform_indices = @transform_0, window_bounds = array<i64: 8, 128>}, {transform_indices = @transform_1, window_bounds = array<i64: 8, 128>}]} {
    %c0 = arith.constant 0 : index
    %c0_0 = arith.constant 0 : index
    %0 = vector.load %arg1[%c0, %c0_0] : memref<8x128xf32, #tpu.memory_space<vmem>>, vector<8x128xf32>
    %cst = arith.constant dense<0.000000e+00> : vector<128xf32>
    %1 = vector.multi_reduction <add>, %0, %cst [0] : vector<8x128xf32> to vector<128xf32>
    %2 = vector.shape_cast %1 : vector<128xf32> to vector<1x128xf32>
    %cst_1 = arith.constant 8.000000e+00 : f32
    %3 = vector.broadcast %cst_1 : f32 to vector<1x128xf32>
    %4 = arith.divf %2, %3 : vector<1x128xf32>
    %5 = vector.broadcast %4 : vector<1x128xf32> to vector<8x128xf32>
    %6 = arith.subf %0, %5 : vector<8x128xf32>
    %7 = arith.mulf %6, %6 : vector<8x128xf32>
    %cst_2 = arith.constant dense<0.000000e+00> : vector<128xf32>
    %8 = vector.multi_reduction <add>, %7, %cst_2 [0] : vector<8x128xf32> to vector<128xf32>
    %9 = vector.shape_cast %8 : vector<128xf32> to vector<1x128xf32>
    %cst_3 = arith.constant 8.000000e+00 : f32
    %10 = vector.broadcast %cst_3 : f32 to vector<1x128xf32>
    %11 = arith.divf %9, %10 : vector<1x128xf32>
    %12 = vector.broadcast %4 : vector<1x128xf32> to vector<8x128xf32>
    %13 = arith.subf %0, %12 : vector<8x128xf32>
    %cst_4 = arith.constant 1.000000e-03 : f32
    %14 = vector.broadcast %cst_4 : f32 to vector<1x128xf32>
    %15 = arith.addf %11, %14 : vector<1x128xf32>
    %16 = math.rsqrt %15 : vector<1x128xf32>
    %17 = vector.broadcast %16 : vector<1x128xf32> to vector<8x128xf32>
    %18 = arith.mulf %13, %17 : vector<8x128xf32>
    %cst_5 = arith.constant 0.000000e+00 : f32
    %19 = vector.broadcast %cst_5 : f32 to vector<8x128xf32>
    %20 = arith.maximumf %18, %19 : vector<8x128xf32>
    %c0_6 = arith.constant 0 : index
    %c0_7 = arith.constant 0 : index
    %21 = vector.load %arg2[%c0_6, %c0_7] : memref<8x128xf32, #tpu.memory_space<vmem>>, vector<8x128xf32>
    tpu.vector_store %arg2[%c0_6, %c0_7], %20 {strides = array<i32>} : memref<8x128xf32, #tpu.memory_space<vmem>>, vector<8x128xf32>,
    return
  }
  func.func @transform_0(%arg0: i32) -> (i32, i32) {
    %c0_i32 = arith.constant 0 : i32
    %c0_i32_0 = arith.constant 0 : i32
    return %c0_i32, %arg0 : i32, i32
  }
  func.func @transform_1(%arg0: i32) -> (i32, i32) {
    %c0_i32 = arith.constant 0 : i32
    %c0_i32_0 = arith.constant 0 : i32
    return %c0_i32, %arg0 : i32, i32
  }
}

module attributes {stable_mosaic.version = 11 : i64} {
  func.func @_linear_kernel(%arg0: i32, %arg1: i32, %arg2: i32, %arg3: memref<8x128xf32, #tpu.memory_space<vmem>>, %arg4: memref<128x128xf32, #tpu.memory_space<vmem>>, %arg5: memref<1x128xf32, #tpu.memory_space<vmem>>, %arg6: memref<8x128xf32, #tpu.memory_space<vmem>>, %arg7: memref<8x128xf32, #tpu.memory_space<vmem>>) attributes {dimension_semantics = [#tpu.dimension_semantics<parallel>, #tpu.dimension_semantics<parallel>, #tpu.dimension_semantics<arbitrary>], iteration_bounds = array<i64: 1, 1, 1>, scalar_prefetch = 0 : i64, scratch_operands = 1 : i64, tpu.core_type = #tpu.core_type<tc>, window_params = [{transform_indices = @transform_0, window_bounds = array<i64: 8, 128>}, {transform_indices = @transform_1, window_bounds = array<i64: 128, 128>}, {transform_indices = @transform_2, window_bounds = array<i64: 1, 128>}, {transform_indices = @transform_3, window_bounds = array<i64: 8, 128>}]} {
    %c0_i32 = arith.constant 0 : i32
    %0 = arith.cmpi eq, %arg2, %c0_i32 : i32
    %1 = arith.extui %0 : i1 to i32
    %c0_i32_0 = arith.constant 0 : i32
    %2 = arith.cmpi ne, %1, %c0_i32_0 : i32
    scf.if %2 {
      %cst_10 = arith.constant 0.000000e+00 : f32
      %12 = vector.broadcast %cst_10 : f32 to vector<8x128xf32>
      %c0_11 = arith.constant 0 : index
      %c0_12 = arith.constant 0 : index
      %13 = vector.load %arg7[%c0_11, %c0_12] : memref<8x128xf32, #tpu.memory_space<vmem>>, vector<8x128xf32>
      tpu.vector_store %arg7[%c0_11, %c0_12], %12 {strides = array<i32>} : memref<8x128xf32, #tpu.memory_space<vmem>>, vector<8x128xf32>,
    } else {
    }
    %c0 = arith.constant 0 : index
    %c0_1 = arith.constant 0 : index
    %3 = vector.load %arg7[%c0, %c0_1] : memref<8x128xf32, #tpu.memory_space<vmem>>, vector<8x128xf32>
    %c0_2 = arith.constant 0 : index
    %c0_3 = arith.constant 0 : index
    %4 = vector.load %arg3[%c0_2, %c0_3] : memref<8x128xf32, #tpu.memory_space<vmem>>, vector<8x128xf32>
    %c0_4 = arith.constant 0 : index
    %c0_5 = arith.constant 0 : index
    %5 = vector.load %arg4[%c0_4, %c0_5] : memref<128x128xf32, #tpu.memory_space<vmem>>, vector<128x128xf32>
    %cst = arith.constant dense<0.000000e+00> : vector<8x128xf32>
    %6 = tpu.matmul %4, %5, %cst {dimension_numbers = #tpu.dot_dimension_numbers<[1], [1], [0], [0], [0, 0, 1, 0], [], []>} : vector<8x128xf32>, vector<128x128xf32>, vector<8x128xf32> -> vector<8x128xf32>
    %7 = arith.addf %3, %6 : vector<8x128xf32>
    %c0_6 = arith.constant 0 : index
    %c0_7 = arith.constant 0 : index
    %8 = vector.load %arg7[%c0_6, %c0_7] : memref<8x128xf32, #tpu.memory_space<vmem>>, vector<8x128xf32>
    tpu.vector_store %arg7[%c0_6, %c0_7], %7 {strides = array<i32>} : memref<8x128xf32, #tpu.memory_space<vmem>>, vector<8x128xf32>,
    %c0_i32_8 = arith.constant 0 : i32
    %9 = arith.cmpi eq, %arg2, %c0_i32_8 : i32
    %10 = arith.extui %9 : i1 to i32
    %c0_i32_9 = arith.constant 0 : i32
    %11 = arith.cmpi ne, %10, %c0_i32_9 : i32
    scf.if %11 {
      %c0_10 = arith.constant 0 : index
      %c0_11 = arith.constant 0 : index
      %12 = vector.load %arg7[%c0_10, %c0_11] : memref<8x128xf32, #tpu.memory_space<vmem>>, vector<8x128xf32>
      %c0_12 = arith.constant 0 : index
      %c0_13 = arith.constant 0 : index
      %13 = vector.load %arg5[%c0_12, %c0_13] : memref<1x128xf32, #tpu.memory_space<vmem>>, vector<1x128xf32>
      %14 = vector.broadcast %13 : vector<1x128xf32> to vector<8x128xf32>
      %15 = arith.addf %12, %14 : vector<8x128xf32>
      %c0_14 = arith.constant 0 : index
      %c0_15 = arith.constant 0 : index
      %16 = vector.load %arg6[%c0_14, %c0_15] : memref<8x128xf32, #tpu.memory_space<vmem>>, vector<8x128xf32>
      tpu.vector_store %arg6[%c0_14, %c0_15], %15 {strides = array<i32>} : memref<8x128xf32, #tpu.memory_space<vmem>>, vector<8x128xf32>,
    } else {
    }
    return
  }
  func.func @transform_0(%arg0: i32, %arg1: i32, %arg2: i32) -> (i32, i32) {
    %c0_i32 = arith.constant 0 : i32
    return %arg0, %arg2 : i32, i32
  }
  func.func @transform_1(%arg0: i32, %arg1: i32, %arg2: i32) -> (i32, i32) {
    %c0_i32 = arith.constant 0 : i32
    return %arg1, %arg2 : i32, i32
  }
  func.func @transform_2(%arg0: i32, %arg1: i32, %arg2: i32) -> (i32, i32) {
    %c0_i32 = arith.constant 0 : i32
    %c0_i32_0 = arith.constant 0 : i32
    return %c0_i32, %arg1 : i32, i32
  }
  func.func @transform_3(%arg0: i32, %arg1: i32, %arg2: i32) -> (i32, i32) {
    %c0_i32 = arith.constant 0 : i32
    return %arg0, %arg1 : i32, i32
  }
}

module attributes {stable_mosaic.version = 11 : i64} {
  func.func @_linear_kernel(%arg0: i32, %arg1: i32, %arg2: i32, %arg3: memref<8x128xf32, #tpu.memory_space<vmem>>, %arg4: memref<128x128xf32, #tpu.memory_space<vmem>>, %arg5: memref<1x128xf32, #tpu.memory_space<vmem>>, %arg6: memref<8x128xf32, #tpu.memory_space<vmem>>, %arg7: memref<8x128xf32, #tpu.memory_space<vmem>>) attributes {dimension_semantics = [#tpu.dimension_semantics<parallel>, #tpu.dimension_semantics<parallel>, #tpu.dimension_semantics<arbitrary>], iteration_bounds = array<i64: 1, 1, 1>, scalar_prefetch = 0 : i64, scratch_operands = 1 : i64, tpu.core_type = #tpu.core_type<tc>, window_params = [{transform_indices = @transform_0, window_bounds = array<i64: 8, 128>}, {transform_indices = @transform_1, window_bounds = array<i64: 128, 128>}, {transform_indices = @transform_2, window_bounds = array<i64: 1, 128>}, {transform_indices = @transform_3, window_bounds = array<i64: 8, 128>}]} {
    %c0_i32 = arith.constant 0 : i32
    %0 = arith.cmpi eq, %arg2, %c0_i32 : i32
    %1 = arith.extui %0 : i1 to i32
    %c0_i32_0 = arith.constant 0 : i32
    %2 = arith.cmpi ne, %1, %c0_i32_0 : i32
    scf.if %2 {
      %cst_10 = arith.constant 0.000000e+00 : f32
      %12 = vector.broadcast %cst_10 : f32 to vector<8x128xf32>
      %c0_11 = arith.constant 0 : index
      %c0_12 = arith.constant 0 : index
      %13 = vector.load %arg7[%c0_11, %c0_12] : memref<8x128xf32, #tpu.memory_space<vmem>>, vector<8x128xf32>
      tpu.vector_store %arg7[%c0_11, %c0_12], %12 {strides = array<i32>} : memref<8x128xf32, #tpu.memory_space<vmem>>, vector<8x128xf32>,
    } else {
    }
    %c0 = arith.constant 0 : index
    %c0_1 = arith.constant 0 : index
    %3 = vector.load %arg7[%c0, %c0_1] : memref<8x128xf32, #tpu.memory_space<vmem>>, vector<8x128xf32>
    %c0_2 = arith.constant 0 : index
    %c0_3 = arith.constant 0 : index
    %4 = vector.load %arg3[%c0_2, %c0_3] : memref<8x128xf32, #tpu.memory_space<vmem>>, vector<8x128xf32>
    %c0_4 = arith.constant 0 : index
    %c0_5 = arith.constant 0 : index
    %5 = vector.load %arg4[%c0_4, %c0_5] : memref<128x128xf32, #tpu.memory_space<vmem>>, vector<128x128xf32>
    %cst = arith.constant dense<0.000000e+00> : vector<8x128xf32>
    %6 = tpu.matmul %4, %5, %cst {dimension_numbers = #tpu.dot_dimension_numbers<[1], [1], [0], [0], [0, 0, 1, 0], [], []>} : vector<8x128xf32>, vector<128x128xf32>, vector<8x128xf32> -> vector<8x128xf32>
    %7 = arith.addf %3, %6 : vector<8x128xf32>
    %c0_6 = arith.constant 0 : index
    %c0_7 = arith.constant 0 : index
    %8 = vector.load %arg7[%c0_6, %c0_7] : memref<8x128xf32, #tpu.memory_space<vmem>>, vector<8x128xf32>
    tpu.vector_store %arg7[%c0_6, %c0_7], %7 {strides = array<i32>} : memref<8x128xf32, #tpu.memory_space<vmem>>, vector<8x128xf32>,
    %c0_i32_8 = arith.constant 0 : i32
    %9 = arith.cmpi eq, %arg2, %c0_i32_8 : i32
    %10 = arith.extui %9 : i1 to i32
    %c0_i32_9 = arith.constant 0 : i32
    %11 = arith.cmpi ne, %10, %c0_i32_9 : i32
    scf.if %11 {
      %c0_10 = arith.constant 0 : index
      %c0_11 = arith.constant 0 : index
      %12 = vector.load %arg7[%c0_10, %c0_11] : memref<8x128xf32, #tpu.memory_space<vmem>>, vector<8x128xf32>
      %c0_12 = arith.constant 0 : index
      %c0_13 = arith.constant 0 : index
      %13 = vector.load %arg5[%c0_12, %c0_13] : memref<1x128xf32, #tpu.memory_space<vmem>>, vector<1x128xf32>
      %14 = vector.broadcast %13 : vector<1x128xf32> to vector<8x128xf32>
      %15 = arith.addf %12, %14 : vector<8x128xf32>
      %16 = math.exp %15 : vector<8x128xf32>
      %cst_14 = arith.constant 9.99999974E-5 : f32
      %17 = vector.broadcast %cst_14 : f32 to vector<8x128xf32>
      %18 = arith.addf %16, %17 : vector<8x128xf32>
      %c0_15 = arith.constant 0 : index
      %c0_16 = arith.constant 0 : index
      %19 = vector.load %arg6[%c0_15, %c0_16] : memref<8x128xf32, #tpu.memory_space<vmem>>, vector<8x128xf32>
      tpu.vector_store %arg6[%c0_15, %c0_16], %18 {strides = array<i32>} : memref<8x128xf32, #tpu.memory_space<vmem>>, vector<8x128xf32>,
    } else {
    }
    return
  }
  func.func @transform_0(%arg0: i32, %arg1: i32, %arg2: i32) -> (i32, i32) {
    %c0_i32 = arith.constant 0 : i32
    return %arg0, %arg2 : i32, i32
  }
  func.func @transform_1(%arg0: i32, %arg1: i32, %arg2: i32) -> (i32, i32) {
    %c0_i32 = arith.constant 0 : i32
    return %arg1, %arg2 : i32, i32
  }
  func.func @transform_2(%arg0: i32, %arg1: i32, %arg2: i32) -> (i32, i32) {
    %c0_i32 = arith.constant 0 : i32
    %c0_i32_0 = arith.constant 0 : i32
    return %c0_i32, %arg1 : i32, i32
  }
  func.func @transform_3(%arg0: i32, %arg1: i32, %arg2: i32) -> (i32, i32) {
    %c0_i32 = arith.constant 0 : i32
    return %arg0, %arg1 : i32, i32
  }
}

</mosaic_0001>

<bundles_post_ra>
// kernel: mul.14
= control target key start
LH: loop header
LB: loop body
LE: loop exit
PB: predicated region body
PF: predicated region fallthrough
CT: control target
= control target key end

     0   :  { %3 = vsyncpa [#allocation1], 0  ;;  %s194_s0 = inlined_call_operand.hbm [shape: f32[128,48], index: 0, kind: input, shape index: {}]   ;;  %s195_s1 = inlined_call_operand.hbm [shape: f32[128,48], index: 1, kind: input, shape index: {}]   ;;  %s196_s2 = inlined_call_operand.vmem [shape: f32[128,48], index: 2, kind: output, shape index: {}]  }
   0x1   :  { %s7_s0 = sshll.u32 %s194_s0, 4  ;;  %s8_s0 = int_to_ptr.hbm [resolvable:$true] %s7_s0 }
   0x2   :  { %4 = vsyncpa [#allocation3], 0  ;;  %s151_s11 = smov [#allocation0]   ;;  %s18_s1 = sshll.u32 %s195_s1, 4  ;;  %s19_s1 = int_to_ptr.hbm [resolvable:$true] %s18_s1 }
   0x3   :  { %s9_s12 = sshll.u32 %s151_s11, 4  ;;  %s152_s15 = smov 128   ;;  %s10_s12 = int_to_ptr.vmem [resolvable:$true] %s9_s12 }
   0x4   :  { %s153_s16 = smov 8   ;;  %s154_s17 = smov [#allocation2]  }
   0x5   :  { %15 = dma.hbm_to_vmem [thread:$0]  %s8_s0, 768, %s10_s12, [#allocation1], %s152_s15, %s152_s15, %s153_s16  }
   0x6   :  { %s20_s18 = sshll.u32 %s154_s17, 4  ;;  %s21_s18 = int_to_ptr.vmem [resolvable:$true] %s20_s18 }
   0x7   :  { %26 = dma.hbm_to_vmem [thread:$0]  %s19_s1, 768, %s21_s18, [#allocation3], %s152_s15, %s152_s15, %s153_s16  }
   0x8   :  { %147 = dma.done.wait [#allocation1], 768  }
   0x9   :  { %148 = vsyncadd [#allocation1], 4294966528 }
   0xa   :  { %149 = dma.done.wait [#allocation3], 768  }
   0xb   :  { %150 = vsyncadd [#allocation3], 4294966528  ;;  %v31_v0 = vld [vmem:[#allocation0] sm:$0xff]  ;;  %v32_v1 = vld [vmem:[#allocation2] sm:$0xff] }
   0xc   :  { %v39_v2 = vld [vmem:[#allocation0 + $0x8] sm:$0xff]  ;;  %v35_v3 = vmul.f32 %v32_v1, %v31_v0  ;;  %v41_v4 = vld [vmem:[#allocation2 + $0x8] sm:$0xff]  ;;  %v49_v5 = vld [vmem:[#allocation0 + $0x10] sm:$0xff] }
   0xd   :  { %v51_v6 = vld [vmem:[#allocation2 + $0x10] sm:$0xff]  ;;  %v44_v7 = vmul.f32 %v41_v4, %v39_v2  ;;  %v59_v9 = vld [vmem:[#allocation0 + $0x18] sm:$0xff]  ;;  %v61_v10 = vld [vmem:[#allocation2 + $0x18] sm:$0xff] }
   0xe   :  { %v54_v8 = vmul.f32 %v51_v6, %v49_v5  ;;  %v69_v11 = vld [vmem:[#allocation0 + $0x20] sm:$0xff]  ;;  %37 = vst [vmem:[%s196_s2] sm:$0xff] %v35_v3  ;;  %v64_v12 = vmul.f32 %v61_v10, %v59_v9  ;;  %v71_v13 = vld [vmem:[#allocation2 + $0x20] sm:$0xff]  ;;  %v79_v14 = vld [vmem:[#allocation0 + $0x28] sm:$0xff] }
   0xf   :  { %v81_v15 = vld [vmem:[#allocation2 + $0x28] sm:$0xff]  ;;  %90 = vst [vmem:[%s196_s2 + $0x8] sm:$0xff] %v44_v7  ;;  %v74_v16 = vmul.f32 %v71_v13, %v69_v11 }
  0x10   :  { %v84_v17 = vmul.f32 %v81_v15, %v79_v14  ;;  %91 = vst [vmem:[%s196_s2 + $0x10] sm:$0xff] %v54_v8 }
  0x11   :  { %92 = vst [vmem:[%s196_s2 + $0x18] sm:$0xff] %v64_v12 }
  0x12   :  { %93 = vst [vmem:[%s196_s2 + $0x20] sm:$0xff] %v74_v16 }
  0x13   :  { %94 = vst [vmem:[%s196_s2 + $0x28] sm:$0xff] %v84_v17 }
  0x14   :  { %88 = vsyncpa [#allocation1], 1 }
  0x15   :  { %89 = vsyncpa [#allocation3], 1 }

// kernel: encoder_forward.5
= control target key start
LH: loop header
LB: loop body
LE: loop exit
PB: predicated region body
PF: predicated region fallthrough
CT: control target
= control target key end

     0   :  { %v55_v1 = vmov 8.0   ;;  %s72_s0 = inlined_call_operand.vmem [shape: f32[8,128], index: 0, kind: input, shape index: {}]   ;;  %s73_s1 = inlined_call_operand.vmem [shape: f32[8,128], index: 1, kind: output, shape index: {}]  }
   0x1   :  { %v8_v0 = vld [vmem:[%s72_s0] sm:$0xff]  ;;  %51 = vrcp.f32 %v55_v1 }
   0x2   :  { %v9_v2 = vrot.slane %v8_v0, 4 }
   0x4   :  { %v10_v3 = vadd.f32 %v9_v2, %v8_v0 }
   0x6   :  { %v11_v4 = vrot.slane %v10_v3, 2 }
   0x7   :  { %v52_v5 = vpop.eup %51 }
   0x8   :  { %v12_v6 = vadd.f32 %v11_v4, %v10_v3  ;;  %v16_v7 = vmul.f32 8.0, %v52_v5  ;;  %vm20_vm0 = vweird.f32 %v52_v5 }
   0xa   :  { %v13_v8 = vrot.slane %v12_v6, 1  ;;  %v17_v9 = vsub.f32 1.0, %v16_v7 }
   0xc   :  { %v18_v10 = vmul.f32 %v52_v5, %v17_v9  ;;  %v14_v11 = vadd.f32 %v13_v8, %v12_v6 }
   0xe   :  { %v19_v12 = vadd.f32 %v52_v5, %v18_v10 }
  0x10   :  { %v21_v13 = vsel %vm20_vm0, %v52_v5, %v19_v12 }
  0x11   :  { %v22_v14 = vmul.f32 %v21_v13, %v14_v11 }
  0x13   :  { %v23_v15 = vsub.f32 %v8_v0, %v22_v14 }
  0x15   :  { %v24_v16 = vmul.f32 %v23_v15, %v23_v15 }
  0x17   :  { %v25_v17 = vrot.slane %v24_v16, 4 }
  0x19   :  { %v26_v18 = vadd.f32 %v25_v17, %v24_v16 }
  0x1b   :  { %v27_v19 = vrot.slane %v26_v18, 2 }
  0x1d   :  { %v28_v20 = vadd.f32 %v27_v19, %v26_v18 }
  0x1f   :  { %v29_v21 = vrot.slane %v28_v20, 1 }
  0x21   :  { %v30_v22 = vadd.f32 %v29_v21, %v28_v20 }
  0x23   :  { %v31_v23 = vmul.f32 %v30_v22, %v21_v13 }
  0x25   :  { %v32_v24 = vadd.f32 0.001, %v31_v23 }
  0x27   :  { %53 = vrsqrt.f32 %v32_v24  ;;  %vm39_vm1 = vweird.f32 %v32_v24 }
  0x2d   :  { %v54_v25 = vpop.eup %53 }
  0x2e   :  { %v34_v26 = vmul.f32 %v54_v25, %v32_v24  ;;  %vm40_vm2 = vweird.f32 %v54_v25 }
  0x2f   :  { %vm41_vm3 = vmor %vm39_vm1, %vm40_vm2 }
  0x30   :  { %v35_v27 = vmul.f32 %v54_v25, %v34_v26 }
  0x32   :  { %v36_v28 = vmul.f32 0.5, %v35_v27 }
  0x34   :  { %v37_v29 = vsub.f32 1.5, %v36_v28 }
  0x36   :  { %v38_v30 = vmul.f32 %v54_v25, %v37_v29 }
  0x38   :  { %v42_v31 = vsel %vm41_vm3, %v54_v25, %v38_v30 }
  0x39   :  { %v43_v32 = vmul.f32 %v42_v31, %v23_v15 }
  0x3b   :  { %v44_v33 = vmax.f32 %v43_v32, 0.0 }
  0x3d   :  { %45 = vst [vmem:[%s73_s1] sm:$0xff] %v44_v33 }

// kernel: encoder_forward.7
= control target key start
LH: loop header
LB: loop body
LE: loop exit
PB: predicated region body
PF: predicated region fallthrough
CT: control target
= control target key end

     0   :  { %s156_s1 = inlined_call_operand.vmem [shape: f32[128,128], index: 1, kind: input, shape index: {}]   ;;  %s157_s2 = inlined_call_operand.vmem [shape: f32[1,128], index: 2, kind: input, shape index: {}]   ;;  %s158_s0 = inlined_call_operand.vmem [shape: f32[8,128], index: 0, kind: input, shape index: {}]   ;;  %s159_s3 = inlined_call_operand.vmem [shape: f32[8,128], index: 3, kind: output, shape index: {}]  }
   0x1   :  { %v36_v0 = vld [vmem:[%s156_s1 + $0x78] sm:$0xff]  ;;  %v35_v1 = vld [vmem:[%s156_s1 + $0x70] sm:$0xff]  ;;  %v34_v2 = vld [vmem:[%s156_s1 + $0x68] sm:$0xff] }
   0x2   :  { %37 = vmatpush.xpose.msra.mxu0 %v36_v0  ;;  %v33_v3 = vld [vmem:[%s156_s1 + $0x60] sm:$0xff]  ;;  %v32_v4 = vld [vmem:[%s156_s1 + $0x58] sm:$0xff]  ;;  %v31_v5 = vld [vmem:[%s156_s1 + $0x50] sm:$0xff] }
   0x3   :  { %v30_v6 = vld [vmem:[%s156_s1 + $0x48] sm:$0xff]  ;;  %v29_v7 = vld [vmem:[%s156_s1 + $0x40] sm:$0xff]  ;;  %v28_v8 = vld [vmem:[%s156_s1 + $0x38] sm:$0xff] }
   0x4   :  { %v27_v9 = vld [vmem:[%s156_s1 + $0x30] sm:$0xff]  ;;  %v26_v10 = vld [vmem:[%s156_s1 + $0x28] sm:$0xff]  ;;  %v25_v11 = vld [vmem:[%s156_s1 + $0x20] sm:$0xff] }
   0x5   :  { %v24_v12 = vld [vmem:[%s156_s1 + $0x18] sm:$0xff]  ;;  %v23_v13 = vld [vmem:[%s156_s1 + $0x10] sm:$0xff]  ;;  %v22_v14 = vld [vmem:[%s156_s1 + $0x8] sm:$0xff] }
   0x6   :  { %38 = vmatpush.xpose.msra.mxu0 %v35_v1  ;;  %v21_v15 = vld [vmem:[%s156_s1] sm:$0xff] }
   0x7   :  { %v20_v16 = vld [vmem:[%s158_s0] sm:$0xff] }
   0x8   :  { %v76_v17 = vld [vmem:[%s157_s2] ss:$0 sm:$0xff] }
   0xa   :  { %39 = vmatpush.xpose.msra.mxu0 %v34_v2 }
   0xe   :  { %40 = vmatpush.xpose.msra.mxu0 %v33_v3 }
  0x12   :  { %41 = vmatpush.xpose.msra.mxu0 %v32_v4 }
  0x16   :  { %42 = vmatpush.xpose.msra.mxu0 %v31_v5 }
  0x1a   :  { %43 = vmatpush.xpose.msra.mxu0 %v30_v6 }
  0x1e   :  { %44 = vmatpush.xpose.msra.mxu0 %v29_v7 }
  0x22   :  { %45 = vmatpush.xpose.msra.mxu0 %v28_v8 }
  0x26   :  { %46 = vmatpush.xpose.msra.mxu0 %v27_v9 }
  0x2a   :  { %47 = vmatpush.xpose.msra.mxu0 %v26_v10 }
  0x2e   :  { %48 = vmatpush.xpose.msra.mxu0 %v25_v11 }
  0x32   :  { %49 = vmatpush.xpose.msra.mxu0 %v24_v12 }
  0x36   :  { %50 = vmatpush.xpose.msra.mxu0 %v23_v13 }
  0x3a   :  { %51 = vmatpush.xpose.msra.mxu0 %v22_v14 }
  0x3e   :  { %52 = vmatpush.xpose.msra.mxu0 %v21_v15 }
  0x41   :  { %53 = vmatmul.f32.vlgmr.msra.gmra.mxu0 %v20_v16 }
  0xbe   :  { %v54_v18 = vpop.f32.mrf.mxu0 }
  0xbf   :  { %v67_v19 = vadd.f32 %v76_v17, %v54_v18 }
  0xc1   :  { %v68_v20 = vmul.f32 1.442695, %v67_v19 }
  0xc3   :  { %77 = vpow2.f32 %v68_v20 }
  0xc9   :  { %v78_v21 = vpop.eup %77 }
  0xca   :  { %v70_v22 = vadd.f32 0.0001, %v78_v21 }
  0xcc   :  { %71 = vst [vmem:[%s159_s3] sm:$0xff] %v70_v22 }

// kernel: encoder_forward.4
= control target key start
LH: loop header
LB: loop body
LE: loop exit
PB: predicated region body
PF: predicated region fallthrough
CT: control target
= control target key end

     0   :  { %s151_s1 = inlined_call_operand.vmem [shape: f32[128,128], index: 1, kind: input, shape index: {}]   ;;  %s152_s2 = inlined_call_operand.vmem [shape: f32[1,128], index: 2, kind: input, shape index: {}]   ;;  %s153_s0 = inlined_call_operand.vmem [shape: f32[8,128], index: 0, kind: input, shape index: {}]   ;;  %s154_s3 = inlined_call_operand.vmem [shape: f32[8,128], index: 3, kind: output, shape index: {}]  }
   0x1   :  { %v36_v0 = vld [vmem:[%s151_s1 + $0x78] sm:$0xff]  ;;  %v35_v1 = vld [vmem:[%s151_s1 + $0x70] sm:$0xff]  ;;  %v34_v2 = vld [vmem:[%s151_s1 + $0x68] sm:$0xff] }
   0x2   :  { %37 = vmatpush.xpose.msra.mxu0 %v36_v0  ;;  %v33_v3 = vld [vmem:[%s151_s1 + $0x60] sm:$0xff]  ;;  %v32_v4 = vld [vmem:[%s151_s1 + $0x58] sm:$0xff]  ;;  %v31_v5 = vld [vmem:[%s151_s1 + $0x50] sm:$0xff] }
   0x3   :  { %v30_v6 = vld [vmem:[%s151_s1 + $0x48] sm:$0xff]  ;;  %v29_v7 = vld [vmem:[%s151_s1 + $0x40] sm:$0xff]  ;;  %v28_v8 = vld [vmem:[%s151_s1 + $0x38] sm:$0xff] }
   0x4   :  { %v27_v9 = vld [vmem:[%s151_s1 + $0x30] sm:$0xff]  ;;  %v26_v10 = vld [vmem:[%s151_s1 + $0x28] sm:$0xff]  ;;  %v25_v11 = vld [vmem:[%s151_s1 + $0x20] sm:$0xff] }
   0x5   :  { %v24_v12 = vld [vmem:[%s151_s1 + $0x18] sm:$0xff]  ;;  %v23_v13 = vld [vmem:[%s151_s1 + $0x10] sm:$0xff]  ;;  %v22_v14 = vld [vmem:[%s151_s1 + $0x8] sm:$0xff] }
   0x6   :  { %38 = vmatpush.xpose.msra.mxu0 %v35_v1  ;;  %v21_v15 = vld [vmem:[%s151_s1] sm:$0xff] }
   0x7   :  { %v20_v16 = vld [vmem:[%s153_s0] sm:$0xff] }
   0x8   :  { %v73_v17 = vld [vmem:[%s152_s2] ss:$0 sm:$0xff] }
   0xa   :  { %39 = vmatpush.xpose.msra.mxu0 %v34_v2 }
   0xe   :  { %40 = vmatpush.xpose.msra.mxu0 %v33_v3 }
  0x12   :  { %41 = vmatpush.xpose.msra.mxu0 %v32_v4 }
  0x16   :  { %42 = vmatpush.xpose.msra.mxu0 %v31_v5 }
  0x1a   :  { %43 = vmatpush.xpose.msra.mxu0 %v30_v6 }
  0x1e   :  { %44 = vmatpush.xpose.msra.mxu0 %v29_v7 }
  0x22   :  { %45 = vmatpush.xpose.msra.mxu0 %v28_v8 }
  0x26   :  { %46 = vmatpush.xpose.msra.mxu0 %v27_v9 }
  0x2a   :  { %47 = vmatpush.xpose.msra.mxu0 %v26_v10 }
  0x2e   :  { %48 = vmatpush.xpose.msra.mxu0 %v25_v11 }
  0x32   :  { %49 = vmatpush.xpose.msra.mxu0 %v24_v12 }
  0x36   :  { %50 = vmatpush.xpose.msra.mxu0 %v23_v13 }
  0x3a   :  { %51 = vmatpush.xpose.msra.mxu0 %v22_v14 }
  0x3e   :  { %52 = vmatpush.xpose.msra.mxu0 %v21_v15 }
  0x41   :  { %53 = vmatmul.f32.vlgmr.msra.gmra.mxu0 %v20_v16 }
  0xbe   :  { %v54_v18 = vpop.f32.mrf.mxu0 }
  0xbf   :  { %v67_v19 = vadd.f32 %v73_v17, %v54_v18 }
  0xc1   :  { %68 = vst [vmem:[%s154_s3] sm:$0xff] %v67_v19 }

</bundles_post_ra>
